<compile_context>
chip_gen: v7x
topology: tpu7x:2x2x1
jax: 0.10.0
libtpu: 0.0.40
codegen_flags: <defaults>
</compile_context>

<pallas_src>
import math
from functools import partial

import jax
import jax.numpy as jnp
from jax.experimental import pallas as pl
from jax.experimental.pallas import tpu as pltpu

_SQRT_HALF = 0.7071067811865476  # 1/sqrt(2), hoisted (avoid an in-kernel divide)


def _gelu(h, approximate):
    if approximate:
        # tanh-approx routes to the EUP slot (cheap next to MXU pushes).
        return jax.nn.gelu(h, approximate=True)
    # exact (erf-based) GELU in f32, matching torch.nn.GELU() default.
    return 0.5 * h * (1.0 + jax.lax.erf(h * _SQRT_HALF))


def _mlp_kernel_resident(x_ref, w1_ref, b1_ref, w2_ref, b2_ref, o_ref, *,
                         compute_dtype, approximate_gelu):
    # Weights fully resident; 1-D token grid; no accumulator / RMW traffic.
    x = x_ref[...].astype(compute_dtype)
    h = jnp.dot(x, w1_ref[...].astype(compute_dtype),
                preferred_element_type=jnp.float32)
    h = h + b1_ref[...].astype(jnp.float32)
    h = _gelu(h, approximate_gelu)
    out = jnp.dot(h.astype(compute_dtype), w2_ref[...].astype(compute_dtype),
                  preferred_element_type=jnp.float32)
    o_ref[...] = (out + b2_ref[...].astype(jnp.float32)).astype(o_ref.dtype)


def _mlp_kernel_streamed(x_ref, w1_ref, b1_ref, w2_ref, b2_ref, o_ref, acc_ref,
                         *, compute_dtype, approximate_gelu):
    # grid = (token_tiles, hidden_tiles); hidden axis (last, "arbitrary")
    # accumulates into acc_ref (output block index constant along it).
    # GELU per hidden tile is exact because the fc1 reduction (C_in) is never split.
    j = pl.program_id(1)

    @pl.when(j == 0)
    def _():
        acc_ref[...] = jnp.broadcast_to(b2_ref[...].astype(jnp.float32),
                                        acc_ref.shape)

    x = x_ref[...].astype(compute_dtype)
    h = jnp.dot(x, w1_ref[...].astype(compute_dtype),
                preferred_element_type=jnp.float32)
    h = h + b1_ref[...].astype(jnp.float32)
    h = _gelu(h, approximate_gelu)
    acc_ref[...] += jnp.dot(h.astype(compute_dtype), w2_ref[...].astype(compute_dtype),
                            preferred_element_type=jnp.float32)

    @pl.when(j == pl.num_programs(1) - 1)
    def _():
        o_ref[...] = acc_ref[...].astype(o_ref.dtype)


def _round_up(x, m):
    return (x + m - 1) // m * m


def mlp_pallas(x, w1, b1, w2, b2, *, token_tile=None, hidden_tile=None,
               compute_dtype=None, approximate_gelu=False):
    """x: (..., C_in).  Weights stored transposed relative to PyTorch Linear:
    w1: (C_in, H), b1: (1, H), w2: (H, C_out), b2: (1, C_out).

    hidden_tile=None -> stream the hidden dim only if the weights do not fit
    the generation's VMEM budget; an explicit hidden_tile < H forces streaming.
    """
    orig_shape = x.shape
    c_in = int(orig_shape[-1])
    n_tokens = int(math.prod(orig_shape[:-1]))
    hidden = int(w1.shape[1])
    c_out = int(w2.shape[1])
    out_dtype = x.dtype
    if compute_dtype is None:
        compute_dtype = jnp.result_type(x.dtype, w1.dtype)
    compute_dtype = jnp.dtype(compute_dtype)

    x2d = x.reshape(n_tokens, c_in)

    # ---- generation-aware VMEM budget ----------------------------------------
    try:
        vmem_cap = int(pltpu.get_tpu_info().vmem_capacity_bytes)
    except Exception:
        vmem_cap = 64 << 20      # conservative: v7x per-TC VMEM
    budget = int(0.80 * vmem_cap)
    margin = 4 << 20             # layout padding / internal scratch headroom

    def nbytes(n, dt):
        return int(n) * jnp.dtype(dt).itemsize

    # ---- lane-dense output: pad C_out to a multiple of 128 -------------------
    c_out_p = _round_up(c_out, 128)

    # ---- token (sublane) alignment --------------------------------------------
    align = max(8, 32 // jnp.dtype(x.dtype).itemsize)   # 8 f32, 16 bf16
    n_aligned = _round_up(max(n_tokens, 1), align)

    # Double-buffered footprint of fully-resident weights.
    resident_w_bytes = 2 * (nbytes(c_in * hidden, w1.dtype)
                            + nbytes(hidden, b1.dtype)
                            + nbytes(hidden * c_out_p, w2.dtype)
                            + nbytes(c_out_p, b2.dtype))

    def io_bytes(tm, th, streamed):
        b = 2 * nbytes(tm * c_in, x.dtype)            # x tiles (double-buffered)
        b += 2 * nbytes(tm * c_out_p, out_dtype)       # out tiles
        b += nbytes(tm * th, jnp.float32)              # fc1/GELU intermediate
        b += nbytes(tm * th, compute_dtype)            # cast feed for 2nd matmul
        if streamed:
            b += nbytes(tm * c_out_p, jnp.float32)     # f32 accumulator scratch
        return b

    def streamed_w_bytes(th):
        return 2 * (nbytes(c_in * th, w1.dtype) + nbytes(th, b1.dtype)
                    + nbytes(th * c_out_p, w2.dtype) + nbytes(c_out_p, b2.dtype))

    # ---- resident vs streamed policy ------------------------------------------
    force_stream = (hidden_tile is not None
                    and _round_up(int(hidden_tile), 128) < hidden)
    use_streamed = force_stream
    tm = None
    if not use_streamed:
        tm_try = 256 if token_tile is None else int(token_tile)
        tm_try = max(align, _round_up(min(tm_try, n_aligned), align))
        while (tm_try > align
               and resident_w_bytes + io_bytes(tm_try, hidden, False) + margin > budget):
            tm_try = max(align, _round_up(tm_try // 2, align))
        if resident_w_bytes + io_bytes(tm_try, hidden, False) + margin > budget:
            use_streamed = True          # weights cannot be resident: stream them
        else:
            tm = tm_try

    if use_streamed:
        tm = 512 if token_tile is None else int(token_tile)
        tm = max(align, _round_up(min(tm, n_aligned), align))
        if hidden_tile is not None:
            th = max(128, _round_up(min(int(hidden_tile), hidden), 128))
        else:
            th = min(2048, _round_up(hidden, 128))
        # shrink th, then tm, until the per-step footprint fits (best effort)
        while True:
            if streamed_w_bytes(th) + io_bytes(tm, th, True) + margin <= budget:
                break
            if th > 128:
                th = max(128, _round_up(th // 2, 128))
            elif tm > align:
                tm = max(align, _round_up(tm // 2, align))
            else:
                break
        hidden_p = _round_up(hidden, th)
        kt = hidden_p // th
    else:
        th = hidden
        hidden_p = hidden
        kt = 1

    # ---- >=2 token tiles so v7x megacore ("parallel" axis 0) splits work ------
    if _round_up(n_aligned, tm) // tm < 2 and n_aligned > align:
        tm = max(align, _round_up((n_aligned + 1) // 2, align))

    # ---- token padding ---------------------------------------------------------
    n_total = _round_up(n_tokens, tm)
    if n_total != n_tokens:
        x2d = jnp.pad(x2d, ((0, n_total - n_tokens), (0, 0)))
    n_token_tiles = n_total // tm

    # ---- hidden / output padding (exact: zero columns/rows contribute 0) ------
    if hidden_p != hidden:
        w1 = jnp.pad(w1, ((0, 0), (0, hidden_p - hidden)))
        b1 = jnp.pad(b1, ((0, 0), (0, hidden_p - hidden)))
        w2 = jnp.pad(w2, ((0, hidden_p - hidden), (0, 0)))
    if c_out_p != c_out:
        w2 = jnp.pad(w2, ((0, 0), (0, c_out_p - c_out)))
        b2 = jnp.pad(b2, ((0, 0), (0, c_out_p - c_out)))

    # ---- advisory cost estimate (weights counted per token tile when streamed)
    weight_bytes_once = (nbytes(c_in * hidden_p, w1.dtype) + nbytes(hidden_p, b1.dtype)
                         + nbytes(hidden_p * c_out_p, w2.dtype)
                         + nbytes(c_out_p, b2.dtype))
    stream_factor = n_token_tiles if kt > 1 else 1
    flops = 2 * n_total * (c_in * hidden_p + hidden_p * c_out_p)
    bytes_accessed = (nbytes(n_total * c_in, x.dtype)
                      + nbytes(n_total * c_out_p, out_dtype)
                      + stream_factor * weight_bytes_once)
    cost = pl.CostEstimate(flops=int(flops),
                           transcendentals=int(n_total * hidden_p),
                           bytes_accessed=int(bytes_accessed))

    # ---- explicit, generation-safe VMEM limit ----------------------------------
    if kt == 1:
        est = resident_w_bytes + io_bytes(tm, hidden_p, False)
    else:
        est = streamed_w_bytes(th) + io_bytes(tm, th, True)
    vmem_limit = int(min(max(int(1.3 * est) + (8 << 20), 32 << 20),
                         int(0.90 * vmem_cap)))

    if kt == 1:
        kernel = partial(_mlp_kernel_resident,
                         compute_dtype=compute_dtype,
                         approximate_gelu=approximate_gelu)
        grid_spec = pltpu.PrefetchScalarGridSpec(
            num_scalar_prefetch=0,
            grid=(n_token_tiles,),
            in_specs=[
                pl.BlockSpec((tm, c_in), lambda i: (i, 0)),          # x tile
                pl.BlockSpec((c_in, hidden_p), lambda i: (0, 0)),    # w1 (resident)
                pl.BlockSpec((1, hidden_p), lambda i: (0, 0)),       # b1
                pl.BlockSpec((hidden_p, c_out_p), lambda i: (0, 0)),  # w2 (resident)
                pl.BlockSpec((1, c_out_p), lambda i: (0, 0)),        # b2
            ],
            out_specs=pl.BlockSpec((tm, c_out_p), lambda i: (i, 0)),
        )
        dim_sem = ("parallel",)
    else:
        kernel = partial(_mlp_kernel_streamed,
                         compute_dtype=compute_dtype,
                         approximate_gelu=approximate_gelu)
        grid_spec = pltpu.PrefetchScalarGridSpec(
            num_scalar_prefetch=0,
            grid=(n_token_tiles, kt),
            in_specs=[
                pl.BlockSpec((tm, c_in), lambda i, j: (i, 0)),       # x tile
                pl.BlockSpec((c_in, th), lambda i, j: (0, j)),       # w1 tile
                pl.BlockSpec((1, th), lambda i, j: (0, j)),          # b1 tile
                pl.BlockSpec((th, c_out_p), lambda i, j: (j, 0)),    # w2 tile
                pl.BlockSpec((1, c_out_p), lambda i, j: (0, 0)),     # b2
            ],
            out_specs=pl.BlockSpec((tm, c_out_p), lambda i, j: (i, 0)),
            scratch_shapes=[pltpu.VMEM((tm, c_out_p), jnp.float32)],
        )
        dim_sem = ("parallel", "arbitrary")

    out2d = pl.pallas_call(
        kernel,
        out_shape=jax.ShapeDtypeStruct((n_total, c_out_p), out_dtype),
        grid_spec=grid_spec,
        compiler_params=pltpu.CompilerParams(
            dimension_semantics=dim_sem,
            vmem_limit_bytes=vmem_limit),
        cost_estimate=cost,
    )(x2d, w1, b1, w2, b2)

    out2d = out2d[:n_tokens, :c_out]
    return out2d.reshape(*orig_shape[:-1], c_out)


def init_mlp_params(key, in_features, hidden_features, out_features,
                    dtype=jnp.float32):
    """Mimics nn.Linear defaults (uniform +/- 1/sqrt(fan_in)); weights stored
    transposed, i.e. (in, out), for direct x @ W use."""
    k1, k2, k3, k4 = jax.random.split(key, 4)
    bound1 = 1.0 / math.sqrt(in_features)
    bound2 = 1.0 / math.sqrt(hidden_features)
    w1 = jax.random.uniform(k1, (in_features, hidden_features),
                            minval=-bound1, maxval=bound1, dtype=jnp.float32)
    b1 = jax.random.uniform(k2, (1, hidden_features),
                            minval=-bound1, maxval=bound1, dtype=jnp.float32)
    w2 = jax.random.uniform(k3, (hidden_features, out_features),
                            minval=-bound2, maxval=bound2, dtype=jnp.float32)
    b2 = jax.random.uniform(k4, (1, out_features),
                            minval=-bound2, maxval=bound2, dtype=jnp.float32)
    return tuple(p.astype(dtype) for p in (w1, b1, w2, b2))


def mlp_reference(x2d, w1, b1, w2, b2):
    x2d = x2d.astype(jnp.float32)
    h = x2d @ w1.astype(jnp.float32) + b1.astype(jnp.float32)[0]
    h = 0.5 * h * (1.0 + jax.lax.erf(h * _SQRT_HALF))
    return h @ w2.astype(jnp.float32) + b2.astype(jnp.float32)[0]


if __name__ == "__main__":
    key = jax.random.PRNGKey(0)
    kx, kp = jax.random.split(key)

    B, S = 2, 8            # batch, sequence -> 16 tokens
    c_in, hidden, c_out = 32, 64, 32

    # --- config 1: float32, resident-weight path, exact erf-GELU ---------------
    x = jax.random.normal(kx, (B, S, c_in), dtype=jnp.float32)
    w1, b1, w2, b2 = init_mlp_params(kp, c_in, hidden, c_out, dtype=jnp.float32)
    out = jax.block_until_ready(mlp_pallas(x, w1, b1, w2, b2))
    ref = mlp_reference(x.reshape(-1, c_in), w1, b1, w2, b2).reshape(B, S, c_out)
    assert out.shape == (B, S, c_out)
    assert float(jnp.max(jnp.abs(out - ref))) < 1e-4

    # --- config 2: bf16, explicit hidden_tile forces the streamed (kt>1) path --
    hidden2 = 256
    x16 = jax.random.normal(kx, (B, S, c_in), dtype=jnp.float32).astype(jnp.bfloat16)
    p16 = init_mlp_params(kp, c_in, hidden2, c_out, dtype=jnp.bfloat16)
    out16 = jax.block_until_ready(mlp_pallas(x16, *p16, hidden_tile=128))
    ref16 = mlp_reference(x16.reshape(-1, c_in).astype(jnp.float32),
                          *[p.astype(jnp.float32) for p in p16]
                          ).reshape(B, S, c_out)
    assert out16.shape == (B, S, c_out)
    # bf16 MXU inputs / bf16 output storage -> loosened tolerance
    assert float(jnp.max(jnp.abs(out16.astype(jnp.float32) - ref16))) < 0.15

    # TODO(synk): nn.Dropout with p>0 (training mode) would need pltpu.prng_* masking.
    print("KERNEL_OK")
</pallas_src>

<mosaic_0001>
module attributes {stable_mosaic.version = 11 : i64} {
  func.func @_mlp_kernel_resident(%arg0: i32, %arg1: memref<8x32xf32, #tpu.memory_space<vmem>>, %arg2: memref<32x64xf32, #tpu.memory_space<vmem>>, %arg3: memref<1x64xf32, #tpu.memory_space<vmem>>, %arg4: memref<64x128xf32, #tpu.memory_space<vmem>>, %arg5: memref<1x128xf32, #tpu.memory_space<vmem>>, %arg6: memref<8x128xf32, #tpu.memory_space<vmem>>) attributes {dimension_semantics = [#tpu.dimension_semantics<parallel>], iteration_bounds = array<i64: 2>, scalar_prefetch = 0 : i64, scratch_operands = 0 : i64, tpu.core_type = #tpu.core_type<tc>, window_params = [{transform_indices = @transform_0, window_bounds = array<i64: 8, 32>}, {pipeline_mode = #tpu.pipeline_mode<synchronous>, transform_indices = @transform_1, window_bounds = array<i64: 32, 64>}, {pipeline_mode = #tpu.pipeline_mode<synchronous>, transform_indices = @transform_2, window_bounds = array<i64: 1, 64>}, {pipeline_mode = #tpu.pipeline_mode<synchronous>, transform_indices = @transform_3, window_bounds = array<i64: 64, 128>}, {pipeline_mode = #tpu.pipeline_mode<synchronous>, transform_indices = @transform_4, window_bounds = array<i64: 1, 128>}, {transform_indices = @transform_5, window_bounds = array<i64: 8, 128>}]} {
    %c0 = arith.constant 0 : index
    %c0_0 = arith.constant 0 : index
    %0 = vector.load %arg1[%c0, %c0_0] : memref<8x32xf32, #tpu.memory_space<vmem>>, vector<8x32xf32>
    %c0_1 = arith.constant 0 : index
    %c0_2 = arith.constant 0 : index
    %1 = vector.load %arg2[%c0_1, %c0_2] : memref<32x64xf32, #tpu.memory_space<vmem>>, vector<32x64xf32>
    %cst = arith.constant dense<0.000000e+00> : vector<8x64xf32>
    %2 = tpu.matmul %0, %1, %cst {dimension_numbers = #tpu.dot_dimension_numbers<[1], [0], [0], [1], [0, 0, 1, 1], [], []>} : vector<8x32xf32>, vector<32x64xf32>, vector<8x64xf32> -> vector<8x64xf32>
    %c0_3 = arith.constant 0 : index
    %c0_4 = arith.constant 0 : index
    %3 = vector.load %arg3[%c0_3, %c0_4] : memref<1x64xf32, #tpu.memory_space<vmem>>, vector<1x64xf32>
    %4 = vector.broadcast %3 : vector<1x64xf32> to vector<8x64xf32>
    %5 = arith.addf %2, %4 : vector<8x64xf32>
    %cst_5 = arith.constant 5.000000e-01 : f32
    %6 = vector.broadcast %cst_5 : f32 to vector<8x64xf32>
    %7 = arith.mulf %6, %5 : vector<8x64xf32>
    %cst_6 = arith.constant 0.707106769 : f32
    %8 = vector.broadcast %cst_6 : f32 to vector<8x64xf32>
    %9 = arith.mulf %5, %8 : vector<8x64xf32>
    %10 = math.erf %9 : vector<8x64xf32>
    %cst_7 = arith.constant 1.000000e+00 : f32
    %11 = vector.broadcast %cst_7 : f32 to vector<8x64xf32>
    %12 = arith.addf %11, %10 : vector<8x64xf32>
    %13 = arith.mulf %7, %12 : vector<8x64xf32>
    %c0_8 = arith.constant 0 : index
    %c0_9 = arith.constant 0 : index
    %14 = vector.load %arg4[%c0_8, %c0_9] : memref<64x128xf32, #tpu.memory_space<vmem>>, vector<64x128xf32>
    %cst_10 = arith.constant dense<0.000000e+00> : vector<8x128xf32>
    %15 = tpu.matmul %13, %14, %cst_10 {dimension_numbers = #tpu.dot_dimension_numbers<[1], [0], [0], [1], [0, 0, 1, 1], [], []>} : vector<8x64xf32>, vector<64x128xf32>, vector<8x128xf32> -> vector<8x128xf32>
    %c0_11 = arith.constant 0 : index
    %c0_12 = arith.constant 0 : index
    %16 = vector.load %arg5[%c0_11, %c0_12] : memref<1x128xf32, #tpu.memory_space<vmem>>, vector<1x128xf32>
    %17 = vector.broadcast %16 : vector<1x128xf32> to vector<8x128xf32>
    %18 = arith.addf %15, %17 : vector<8x128xf32>
    %c0_13 = arith.constant 0 : index
    %c0_14 = arith.constant 0 : index
    %19 = vector.load %arg6[%c0_13, %c0_14] : memref<8x128xf32, #tpu.memory_space<vmem>>, vector<8x128xf32>
    tpu.vector_store %arg6[%c0_13, %c0_14], %18 {strides = array<i32>} : memref<8x128xf32, #tpu.memory_space<vmem>>, vector<8x128xf32>,
    return
  }
  func.func @transform_0(%arg0: i32) -> (i32, i32) {
    %c0_i32 = arith.constant 0 : i32
    %c0_i32_0 = arith.constant 0 : i32
    return %arg0, %c0_i32 : i32, i32
  }
  func.func @transform_1(%arg0: i32) -> (i32, i32) {
    %c0_i32 = arith.constant 0 : i32
    %c0_i32_0 = arith.constant 0 : i32
    %c0_i32_1 = arith.constant 0 : i32
    return %c0_i32, %c0_i32_0 : i32, i32
  }
  func.func @transform_2(%arg0: i32) -> (i32, i32) {
    %c0_i32 = arith.constant 0 : i32
    %c0_i32_0 = arith.constant 0 : i32
    %c0_i32_1 = arith.constant 0 : i32
    return %c0_i32, %c0_i32_0 : i32, i32
  }
  func.func @transform_3(%arg0: i32) -> (i32, i32) {
    %c0_i32 = arith.constant 0 : i32
    %c0_i32_0 = arith.constant 0 : i32
    %c0_i32_1 = arith.constant 0 : i32
    return %c0_i32, %c0_i32_0 : i32, i32
  }
  func.func @transform_4(%arg0: i32) -> (i32, i32) {
    %c0_i32 = arith.constant 0 : i32
    %c0_i32_0 = arith.constant 0 : i32
    %c0_i32_1 = arith.constant 0 : i32
    return %c0_i32, %c0_i32_0 : i32, i32
  }
  func.func @transform_5(%arg0: i32) -> (i32, i32) {
    %c0_i32 = arith.constant 0 : i32
    %c0_i32_0 = arith.constant 0 : i32
    return %arg0, %c0_i32 : i32, i32
  }
}

</mosaic_0001>

<bundles_post_ra>
// kernel: tpu_custom_call.1
= control target key start
LH: loop header
LB: loop body
LE: loop exit
PB: predicated region body
PF: predicated region fallthrough
CT: control target
= control target key end

     0   :  { %10 = vsyncpa [#allocation3], 0  ;;  %s1145_s0 = inlined_call_operand.hbm [shape: f32[16,32], index: 0, kind: input, shape index: {}]   ;;  %s1146_s1 = inlined_call_operand.hbm [shape: f32[32,64], index: 1, kind: input, shape index: {}]   ;;  %s1147_s2 = inlined_call_operand.vmem [shape: f32[1,64], index: 2, kind: input, shape index: {}]   ;;  %s1148_s3 = inlined_call_operand.hbm [shape: f32[64,128], index: 3, kind: input, shape index: {}]   ;;  %s1149_s4 = inlined_call_operand.vmem [shape: f32[1,128], index: 4, kind: input, shape index: {}]   ;;  %s1150_s5 = inlined_call_operand.hbm [shape: f32[16,128], index: 5, kind: output, shape index: {}]  }
   0x1   :  { %12 = vsyncpa [#allocation3 + $0x1], 0 }
   0x2   :  { %13 = vsyncpa [#allocation6], 0 }
   0x3   :  { %14 = vsyncpa [#allocation4], 0 }
   0x4   :  { %16 = vsyncpa [#allocation4 + $0x1], 0  ;;  %s906_s18 = smov 0   ;;  %s908_s19 = smov 0  }
   0x5   :  { %s910_s20 = smov 0   ;;  %s912_s21 = smov 0  }
   0x6 LB: > { %s927_s22 = sadd.s32 4294967295, %s865_s21   ;;  %s553_s23 = sadd.s32 4294967294, %s865_s21   ;;  %s865_s21 = sphi %s912_s21, %s1170_s21   ;;  %s861_s20 = sphi %s910_s20, %s1169_s20   ;;  %s857_s19 = sphi %s908_s19, %s1168_s19   ;;  %s853_s18 = sphi %s906_s18, %s1167_s18  }
   0x7   : > { %p42_p0 = scmp.ne.s32.totalorder %s857_s19, %s853_s18  ;;  %p1151_p1 = scmp.eq.s32.totalorder %s927_s22, 0 }
   0x8   : > { %p156_p3 = scmp.eq.s32.totalorder %s553_s23, 1  ;;  %p554_p5 = scmp.ge.s32.totalorder %s865_s21, 1 }
   0x9   : > { %p936_p4 = por %p1151_p1, %p42_p0  ;;  %p163_p7 = scmp.lt.s32.totalorder %s865_s21, 3 }
   0xa   : > { %p941_p6 = por %p156_p3, %p42_p0  ;;  %s867_s27 = smov [#allocation5]  }
   0xb   : > { %s1154_s24 = scalar_select %p936_p4, 1, 0 }
   0xc   : > { %s1155_s25 = scalar_select %p941_p6, 1, 0 }
   0xd   : > { %p946_p8 = pnand %p554_p5, %p163_p7  ;;  %s175_s28 = sshll.u32 %s867_s27, 4  ;;  %s950_s28 = int_to_ptr.vmem [resolvable:$true] %s175_s28 }
   0xe   : > { %s868_s30 = smov [#allocation7]   ;;  %s709_s9 = scalar_lea.hbm %s1146_s1, 512 }
   0xf   : > { %p647_p9 = pneg %p946_p8  ;;  %s191_s6 = sshll.u32 %s868_s30, 4  ;;  %s961_s6 = int_to_ptr.vmem [resolvable:$true] %s191_s6 }
  0x10   : > { %p710_p12 = scmp.ne.s32.totalorder %s1146_s1, %s709_s9  ;;  %p716_p5 = scmp.lt.u32.totalorder %s709_s9, %s1146_s1 }
  0x11   : > { %p957_p11 = pnand %p647_p9, %p1151_p1 }
  0x13   : > { %p711_p13 = pneg %p957_p11 }
  0x15   : > { %p712_p0 = pnand %p711_p13, %p710_p12 }
  0x17   : > { %p713_p3 = pneg %p712_p0 }
  0x19   : > { %p718_p7 = pnand %p716_p5, %p713_p3 }
  0x1b   : > { %721 = shalt.err (!%p718_p7)
}
  0x1c   : > { %s722_s14 = scalar_lea.vmem %s950_s28, 512  ;;  %p730_p2 = scmp.lt.s32.totalorder %s950_s28, %s950_s28 }
  0x1d   : > { %p723_p9 = scmp.ne.s32.totalorder %s950_s28, %s722_s14  ;;  %p731_p12 = scmp.lt.s32.totalorder %s722_s14, %s722_s14 }
  0x1f   : > { %p725_p10 = pnand %p723_p9, %p711_p13  ;;  %p732_p0 = por %p731_p12, %p730_p2 }
  0x21   : > { %p726_p1 = pneg %p725_p10 }
  0x23   : > { %p733_p6 = pnand %p732_p0, %p726_p1 }
  0x25   : > { %736 = shalt.err (!%p733_p6)
}
  0x26   : > { %s869_s15 = smov 128   ;;  %s870_s16 = smov 8  }
  0x27   : > { %650 = dma.hbm_to_vmem [thread:$0]  (!%p957_p11), %s1146_s1, 512, %s950_s28, [#allocation6], %s869_s15, %s869_s15, %s870_s16  }
  0x28   : > { %s737_s7 = scalar_lea.hbm %s1148_s3, 1024 }
  0x29   : > { %p738_p2 = scmp.ne.s32.totalorder %s1148_s3, %s737_s7  ;;  %p744_p10 = scmp.lt.u32.totalorder %s737_s7, %s1148_s3 }
  0x2b   : > { %p740_p1 = pnand %p738_p2, %p711_p13 }
  0x2d   : > { %p741_p6 = pneg %p740_p1 }
  0x2f   : > { %p746_p3 = pnand %p744_p10, %p741_p6 }
  0x31   : > { %749 = shalt.err (!%p746_p3)
}
  0x32   : > { %s750_s28 = scalar_lea.vmem %s961_s6, 1024  ;;  %p758_p12 = scmp.lt.s32.totalorder %s961_s6, %s961_s6 }
  0x33   : > { %p751_p5 = scmp.ne.s32.totalorder %s961_s6, %s750_s28  ;;  %p759_p0 = scmp.lt.s32.totalorder %s750_s28, %s750_s28 }
  0x35   : > { %p753_p7 = pnand %p751_p5, %p711_p13  ;;  %p760_p2 = por %p759_p0, %p758_p12 }
  0x37   : > { %p754_p9 = pneg %p753_p7 }
  0x39   : > { %p761_p1 = pnand %p760_p2, %p754_p9 }
  0x3b   : > { %764 = shalt.err (!%p761_p1)
}
  0x3c   : > { %653 = dma.hbm_to_vmem [thread:$0]  (!%p957_p11), %s1148_s3, 1024, %s961_s6, [#allocation6], %s869_s15, %s869_s15, %s870_s16  }
  0x3d   : > { %s1016_s14 = sadd.s32 1, %s865_s21   ;;  %s29_s29 = sadd.s32 1, %s861_s20 }
  0x3e   : > { %s26_s17 = ssub.s32 %s865_s21, %s1016_s14  ;;  %p36_p13 = scmp.ne.s32.totalorder %s861_s20, %s857_s19 }
  0x3f   : > { %p27_p6 = scmp.eq.s32.totalorder %s26_s17, 0  ;;  %p37_p10 = scmp.eq.s32.totalorder %s865_s21, 0 }
  0x40   : > { %p1158_p3 = scmp.eq.s32.totalorder %s927_s22, 1  ;;  %p664_p7 = scmp.lt.s32.totalorder %s865_s21, 2 }
  0x41   : > { %s1032_s27 = scalar_select %p27_p6, %s861_s20, %s29_s29  }
  0x42   : > { %p1026_p5 = por %p1158_p3, %p36_p13  ;;  %p38_p9 = por %p37_p10, %p36_p13 }
  0x43   : > { %s208_s30 = sand.u32 1, %s861_s20   ;;  %s559_s6 = sshll.u32 %s865_s21, 7 }
  0x44   : > { %s1159_s23 = scalar_select %p1026_p5, 1, 0 }
  0x45   : > { %s558_s7 = sshll.u32 %s208_s30, 3  ;;  %s1039_s8 = scalar_lea.hbm %s1145_s0, %s559_s6 }
  0x46   : > { %s212_s9 = scalar_lea.vmem [#allocation2], %s558_s7  ;;  %p1043_p11 = pnand %p664_p7, %p38_p9 }
  0x47   : > { %s219_s10 = sshll.u32 %s212_s9, 4  ;;  %s209_s28 = scalar_lea.sflag [#allocation3], %s208_s30  ;;  %s1041_s10 = int_to_ptr.vmem [resolvable:$true] %s219_s10 }
  0x48   : > { %s765_s12 = scalar_lea.hbm %s1039_s8, 128  ;;  %p767_p0 = pneg %p1043_p11 }
  0x49   : > { %p766_p12 = scmp.ne.s32.totalorder %s1039_s8, %s765_s12  ;;  %s770_s17 = scalar_lea.hbm %s1145_s0, 256 }
  0x4a   : > { %p771_p13 = scmp.lt.u32.totalorder %s1039_s8, %s1145_s0  ;;  %p772_p6 = scmp.lt.u32.totalorder %s770_s17, %s765_s12 }
  0x4b   : > { %p768_p2 = pnand %p767_p0, %p766_p12  ;;  %p774_p3 = scmp.lt.u32.totalorder %s765_s12, %s1039_s8 }
  0x4c   : > { %p773_p10 = por %p772_p6, %p771_p13 }
  0x4d   : > { %p769_p1 = pneg %p768_p2 }
  0x4e   : > { %p775_p7 = por %p774_p3, %p773_p10 }
  0x50   : > { %p776_p9 = pnand %p775_p7, %p769_p1 }
  0x52   : > { %779 = shalt.err (!%p776_p9)
}
  0x53   : > { %s780_s30 = scalar_lea.vmem %s1041_s10, 128  ;;  %s871_s15 = smov [#allocation2]  }
  0x54   : > { %p781_p12 = scmp.ne.s32.totalorder %s1041_s10, %s780_s30  ;;  %s785_s16 = sshll.u32 %s871_s15, 4  ;;  %s786_s16 = int_to_ptr.vmem [resolvable:$false] %s785_s16 }
  0x55   : > { %s787_s9 = scalar_lea.vmem %s786_s16, 256  ;;  %p788_p4 = scmp.lt.s32.totalorder %s1041_s10, %s786_s16 }
  0x56   : > { %p783_p2 = pnand %p781_p12, %p767_p0  ;;  %p789_p13 = scmp.lt.s32.totalorder %s787_s9, %s780_s30 }
  0x58   : > { %p784_p5 = pneg %p783_p2  ;;  %p790_p6 = por %p789_p13, %p788_p4 }
  0x5a   : > { %p791_p10 = pnand %p790_p6, %p784_p5 }
  0x5c   : > { %794 = shalt.err (!%p791_p10)
}
  0x5d   : > { %657 = dma.hbm_to_vmem [thread:$0]  (!%p1043_p11), %s1039_s8, 128, %s1041_s10, %s209_s28  }
  0x5e   : > { %228 = sbr.rel (%p946_p8) target bundleno = 574 (0x23e), region = 40  ;;  %s1075_s12 = sand.u32 (!%p946_p8), 1, %s857_s19  }
  0x5f   : > { %s561_s13 = sshll.u32 (!%p946_p8), %s1075_s12, 3  ;;  %s231_s29 = scalar_lea.sflag (!%p946_p8), [#allocation3], %s1075_s12 }
  0x60   : > { %s234_s17 = scalar_lea.vmem (!%p946_p8), [#allocation2], %s561_s13  ;;  %p1161_p4 = scmp.ne.s32.totalorder (!%p946_p8), %s1154_s24, 0 }
  0x65   : > { %840 = dma.done.wait (%p1161_p4), %s231_s29, 128  }
  0x66   : > { %842 = vsyncadd (%p1161_p4), %s231_s29, 4294967168  ;;  %p1162_p5 = scmp.eq.s32.totalorder %s927_s22, 0 }
  0x68   : > { %844 = dma.done.wait (%p1162_p5), [#allocation6], 1536   ;;  %p1163_p8 = pmov %p1162_p5 }
  0x69   : > { %v872_v0 = vmov 0.0|0.0   ;;  %vm873_vm0 = vmmov 0   ;;  %v874_v1 = vmov 0.0   ;;  %v270_v2 = vld [vmem:[#allocation5] sm:$0xff]  ;;  %v271_v3 = vld [vmem:[#allocation5 + $0x8] sm:$0xff]  ;;  %v272_v4 = vld [vmem:[#allocation5 + $0x10] sm:$0xff] }
  0x6a   : > { %846 = vsyncadd (%p1163_p8), [#allocation6], 4294965760  ;;  %617 = vmatprep.subr.bf16.mxu0 %v872_v0  ;;  %595 = vmatprep.mubr.msk.f32.mxu0 %vm873_vm0, %v874_v1  ;;  %v618_v5 = vpack.c.bf16 %v271_v3, %v270_v2  ;;  %v273_v6 = vld [vmem:[#allocation5 + $0x18] sm:$0xff]  ;;  %vm281_vm1 = vcmask 261120   ;;  %v360_v9 = vld [vmem:[#allocation7] sm:$0xff]  ;;  %vm375_vm2 = vcmask 523264  }
  0x6b   : > { %623 = vmatprep.subr.bf16.mxu1 %v872_v0  ;;  %614 = vmatprep.mubr.msk.f32.mxu1 %vm873_vm0, %v874_v1  ;;  %v621_v7 = vpack.c.bf16 %v273_v6, %v272_v4  ;;  %v269_v8 = vld [vmem:[%s234_s17] sm:$0xff]  ;;  %v361_v10 = vld [vmem:[#allocation7 + $0x8] sm:$0xff]  ;;  %v364_v15 = vld [vmem:[#allocation7 + $0x20] sm:$0xff]  ;;  %s570_s11 = sshll.u32 %s927_s22, 7  ;;  %s268_s28 = scalar_lea.vmem [#allocation8], %s561_s13 }
  0x6c   : > { %619 = vmatpush3.bf16.msra.mxu0 %v618_v5  ;;  %v624_v11 = vpack.c.bf16 %v361_v10, %v360_v9  ;;  %v362_v12 = vld [vmem:[#allocation7 + $0x10] sm:$0xff]  ;;  %v363_v13 = vld [vmem:[#allocation7 + $0x18] sm:$0xff]  ;;  %v365_v16 = vld [vmem:[#allocation7 + $0x28] sm:$0xff]  ;;  %s464_s7 = sshll.u32 %s268_s28, 4  ;;  %s1101_s15 = scalar_lea.hbm %s1150_s5, %s570_s11  ;;  %s1103_s7 = int_to_ptr.vmem [resolvable:$true] %s464_s7 }
  0x6d   : > { %620 = vmatprep.subr.bf16.mxu0 %v872_v0  ;;  %v627_v14 = vpack.c.bf16 %v363_v13, %v362_v12  ;;  %v630_v17 = vpack.c.bf16 %v365_v16, %v364_v15  ;;  %v366_v18 = vld [vmem:[#allocation7 + $0x30] sm:$0xff]  ;;  %v367_v19 = vld [vmem:[#allocation7 + $0x38] sm:$0xff]  ;;  %s451_s16 = scalar_lea.sflag [#allocation4], %s1075_s12  ;;  %s795_s9 = scalar_lea.vmem %s1103_s7, 128 }
  0x6e   : > { %625 = vmatpush3.bf16.msra.mxu1 %v624_v11  ;;  %v633_v20 = vpack.c.bf16 %v367_v19, %v366_v18  ;;  %v565_v21 = vld [vmem:[%s1147_s2] ss:$0 sm:$0xff]  ;;  %p796_p11 = scmp.ne.s32.totalorder %s1103_s7, %s795_s9  ;;  %p1164_p0 = scmp.ne.s32.totalorder %s1159_s23, 0 }
  0x6f   : > { %626 = vmatprep.subr.bf16.mxu1 %v872_v0  ;;  %v567_v30 = vld [vmem:[%s1149_s4] ss:$0 sm:$0xff]  ;;  %s875_s22 = smov [#allocation8]  }
  0x70   : > { %622 = vmatpush3.bf16.msra.mxu0 %v621_v7  ;;  %p797_p1 = pnand %p796_p11, %p1164_p0  ;;  %s799_s13 = sshll.u32 %s875_s22, 4  ;;  %s800_s13 = int_to_ptr.vmem [resolvable:$false] %s799_s13 }
  0x71   : > { %s801_s29 = scalar_lea.vmem %s800_s13, 256  ;;  %p802_p7 = scmp.lt.s32.totalorder %s1103_s7, %s800_s13 }
  0x72   : > { %628 = vmatpush3.bf16.msra.mxu1 %v627_v14  ;;  %p798_p3 = pneg %p797_p1  ;;  %p803_p9 = scmp.lt.s32.totalorder %s801_s29, %s795_s9 }
  0x73   : > { %596 = vmatmul.mubr.msk.f32.vlgmr.msra.gmra.mrb[0].mxu0 %vm281_vm1, %v269_v8  ;;  %629 = vmatprep.subr.bf16.mxu1 %v872_v0 }
  0x74   : > { %p804_p12 = por %p803_p9, %p802_p7 }
  0x76   : > { %631 = vmatpush3.bf16.msra.mxu1 %v630_v17  ;;  %p805_p2 = pnand %p804_p12, %p798_p3 }
  0x77   : > { %632 = vmatprep.subr.bf16.mxu1 %v872_v0 }
  0x7a   : > { %634 = vmatpush3.bf16.msra.mxu1 %v633_v20 }
 0x146   : > { %v351_v22 = vpop.f32.mrb[0].mxu0 }
 0x147   : > { %v352_v23 = vadd.f32 %v565_v21, %v351_v22  ;;  %v597_v24 = vpop.f32.mrb[1].mxu0 }
 0x149   : > { %v356_v25 = vmul.f32 0.70710677, %v352_v23  ;;  %v355_v27 = vmul.f32 0.5, %v352_v23 }
 0x14b   : > { %707 = verf.f32 %v356_v25 }
 0x155   : > { %v708_v26 = vpop.eup %707 }
 0x156   : > { %v358_v28 = vadd.f32 1.0, %v708_v26 }
 0x158   : > { %v359_v29 = vmul.f32 %v358_v28, %v355_v27 }
 0x15a   : > { %615 = vmatmul.mubr.msk.f32.vlgmr.msra.gmra.mrb[0].mxu1 %vm375_vm2, %v359_v29 }
 0x22d   : > { %v445_v31 = vpop.f32.mrb[0].mxu1 }
 0x22e   : > { %v446_v32 = vadd.f32 %v567_v30, %v445_v31  ;;  %v616_v33 = vpop.f32.mrb[1].mxu1 }
 0x230   : > { %449 = vst [vmem:[%s268_s28] sm:$0xff] %v446_v32 }
 0x231   : > { %808 = shalt.err (!%p805_p2)
}
 0x232   : > { %s809_s12 = scalar_lea.hbm %s1101_s15, 128  ;;  %s813_s26 = scalar_lea.hbm %s1150_s5, 256 }
 0x233   : > { %p810_p13 = scmp.ne.s32.totalorder %s1101_s15, %s809_s12  ;;  %p814_p4 = scmp.lt.u32.totalorder %s1101_s15, %s1150_s5 }
 0x234   : > { %p815_p5 = scmp.lt.u32.totalorder %s813_s26, %s809_s12  ;;  %p817_p11 = scmp.lt.u32.totalorder %s809_s12, %s1101_s15 }
 0x235   : > { %p811_p6 = pnand %p810_p13, %p1164_p0 }
 0x236   : > { %p816_p8 = por %p815_p5, %p814_p4 }
 0x237   : > { %p812_p10 = pneg %p811_p6 }
 0x238   : > { %p818_p1 = por %p817_p11, %p816_p8 }
 0x23a   : > { %p819_p3 = pnand %p818_p1, %p812_p10 }
 0x23c   : > { %822 = shalt.err (!%p819_p3)
}
 0x23d   : > { %645 = dma.vmem_to_hbm [thread:$0]  (%p1164_p0), %s1103_s7, 128, %s1101_s15, %s451_s16  }
 0x23e PF: > { %s476_s11 = sand.u32 1, %s853_s18   ;;  %p1165_p7 = scmp.ne.s32.totalorder %s1155_s25, 0 }
 0x23f   : > { %p1166_p9 = scmp.ge.s32.totalorder %s865_s21, 2  ;;  %s477_s28 = scalar_lea.sflag [#allocation4], %s476_s11 }
 0x241   : > { %p659_p12 = pnand %p1166_p9, %p1165_p7 }
 0x243   : > { %848 = dma.done.wait (!%p659_p12), %s477_s28, 128  }
 0x244   : > { %850 = vsyncadd (!%p659_p12), %s477_s28, 4294967168  ;;  %p19_p2 = scmp.ge.s32.totalorder %s1016_s14, 4   ;;  %s1167_s18 = smov %s857_s19 }
 0x245   : > { %s1168_s19 = smov %s861_s20  ;;  %s1169_s20 = smov %s1032_s27 }
 0x246   : > { %s1170_s21 = smov %s1016_s14  ;;  %21 = sbr.rel (!%p19_p2) target bundleno = 6 (0x6), region = 93 }
 0x24d   :  { %482 = vsyncpa [#allocation3], 1 }
 0x24e   :  { %484 = vsyncpa [#allocation3 + $0x1], 1 }
 0x24f   :  { %485 = vsyncpa [#allocation6], 1 }
 0x250   :  { %486 = vsyncpa [#allocation4], 1 }
 0x251   :  { %488 = vsyncpa [#allocation4 + $0x1], 1 }

</bundles_post_ra>
